<compile_context>
chip_gen: v5e
topology: v5e:2x2
jax: 0.10.0
libtpu: 0.0.40
codegen_flags: <defaults>
</compile_context>

<pallas_src>
import functools

import jax
import jax.numpy as jnp
from jax import lax
from jax.experimental import pallas as pl
from jax.experimental.pallas import tpu as pltpu

_UNROLL_MAX = 64   # beyond this, use lax.fori_loop instead of full Python unroll


# ----------------------------- Pallas kernel ------------------------------ #
def lstm_kernel(x_ref, wih_ref, whh_ref, b_ref, out_ref, hn_ref, cn_ref,
                gx_ref, *, hidden_size, seq_len, batch):
    """Fused input projection + full LSTM recurrence (time-major).

    x_ref  : (T*B, D)   flattened inputs, rows ordered time-major
    wih_ref: (D, 4H)    W_ih^T
    whh_ref: (H, 4H)    W_hh^T
    b_ref  : (1, 4H)    b_ih + b_hh
    out_ref: (T, B, H)  per-step hidden states (time-major)
    hn_ref : (B, H)     final hidden state
    cn_ref : (B, H)     final cell state
    gx_ref : (T*B, 4H)  VMEM scratch holding the precomputed input gates
    """
    H, T, B = hidden_size, seq_len, batch

    # Fused non-recurrent projection: ONE MXU matmul for all timesteps.
    gx_ref[...] = (
        jnp.dot(x_ref[...], wih_ref[...], preferred_element_type=jnp.float32)
        + b_ref[...]
    )

    whh = whh_ref[...]                       # (H, 4H), loaded once, reused
    h0 = jnp.zeros((B, H), jnp.float32)
    c0 = jnp.zeros((B, H), jnp.float32)

    def step(row0, h, c):
        # Gate layout matches PyTorch: [i | f | g | o], each H wide.
        gates = gx_ref[pl.ds(row0, B), :] + jnp.dot(
            h, whh, preferred_element_type=jnp.float32)
        sg = jax.nn.sigmoid(gates)           # full-width (B, 4H) vreg
        tg = jnp.tanh(gates)                 # full-width (B, 4H) vreg
        i, f = sg[:, 0 * H:1 * H], sg[:, 1 * H:2 * H]
        g, o = tg[:, 2 * H:3 * H], sg[:, 3 * H:4 * H]
        c = f * c + i * g
        h = o * jnp.tanh(c)
        return h, c

    if seq_len <= _UNROLL_MAX:
        # Small T: fully unrolled, (h, c) carries stay in vregs.
        h, c = h0, c0
        for t in range(T):
            h, c = step(t * B, h, c)
            out_ref[t] = h.astype(out_ref.dtype)     # plain time-major store
    else:
        # Long T: bounded live ranges / compile time via fori_loop.
        def body(t, carry):
            h, c = carry
            h, c = step(pl.multiple_of(t * B, B), h, c)
            out_ref[t] = h.astype(out_ref.dtype)
            return h, c
        h, c = lax.fori_loop(0, T, body, (h0, c0))

    # Final states written exactly once.
    hn_ref[...] = h.astype(hn_ref.dtype)
    cn_ref[...] = c.astype(cn_ref.dtype)


# ------------------------------- wrapper ----------------------------------- #
@jax.jit
def encoder_rnn_forward(signal, params):
    """Equivalent of EncoderRNN.forward: flatten(start_dim=2) then LSTM."""
    B, T = signal.shape[0], signal.shape[1]
    x = signal.reshape(B, T, -1).astype(jnp.float32)          # (B, T, D)
    D = x.shape[-1]
    H = params["w_hh_t"].shape[0]

    # Time-major flattened inputs: rows ordered (t0,b0), (t0,b1), (t1,b0), ...
    x_tm = jnp.transpose(x, (1, 0, 2)).reshape(T * B, D)

    out_tm, h_n, c_n = pl.pallas_call(
        functools.partial(lstm_kernel, hidden_size=H, seq_len=T, batch=B),
        out_shape=(
            jax.ShapeDtypeStruct((T, B, H), jnp.float32),      # per-step h
            jax.ShapeDtypeStruct((B, H), jnp.float32),         # h_n
            jax.ShapeDtypeStruct((B, H), jnp.float32),         # c_n
        ),
        in_specs=[
            pl.BlockSpec(memory_space=pltpu.MemorySpace.VMEM),  # x (time-major)
            pl.BlockSpec(memory_space=pltpu.MemorySpace.VMEM),  # W_ih^T
            pl.BlockSpec(memory_space=pltpu.MemorySpace.VMEM),  # W_hh^T
            pl.BlockSpec(memory_space=pltpu.MemorySpace.VMEM),  # bias
        ],
        out_specs=(
            pl.BlockSpec(memory_space=pltpu.MemorySpace.VMEM),
            pl.BlockSpec(memory_space=pltpu.MemorySpace.VMEM),
            pl.BlockSpec(memory_space=pltpu.MemorySpace.VMEM),
        ),
        scratch_shapes=[pltpu.VMEM((T * B, 4 * H), jnp.float32)],
    )(x_tm, params["w_ih_t"], params["w_hh_t"], params["b"])

    output = jnp.transpose(out_tm, (1, 0, 2))                  # (B, T, H)
    return output, (h_n[None, ...], c_n[None, ...])            # (1, B, H) each


# -------------------------- deterministic params --------------------------- #
def init_params(key, input_size, hidden_size):
    # PyTorch nn.LSTM default init: U(-1/sqrt(H), 1/sqrt(H)) for all params.
    bound = 1.0 / float(hidden_size) ** 0.5
    k0, k1, k2, k3 = jax.random.split(key, 4)
    w_ih = jax.random.uniform(k0, (4 * hidden_size, input_size),
                              jnp.float32, -bound, bound)
    w_hh = jax.random.uniform(k1, (4 * hidden_size, hidden_size),
                              jnp.float32, -bound, bound)
    b_ih = jax.random.uniform(k2, (4 * hidden_size,), jnp.float32, -bound, bound)
    b_hh = jax.random.uniform(k3, (4 * hidden_size,), jnp.float32, -bound, bound)
    # Pre-transpose weights / combine biases once (review: no per-call `.T`).
    return {
        "w_ih_t": w_ih.T,                                   # (D, 4H)
        "w_hh_t": w_hh.T,                                   # (H, 4H)
        "b": (b_ih + b_hh).reshape(1, 4 * hidden_size),     # (1, 4H)
    }


# --------------------------- pure-JAX reference ---------------------------- #
def encoder_rnn_reference(signal, params):
    B, T = signal.shape[0], signal.shape[1]
    x = signal.reshape(B, T, -1).astype(jnp.float32)
    H = params["w_hh_t"].shape[0]
    wih_t, whh_t, b = params["w_ih_t"], params["w_hh_t"], params["b"]

    def step_fn(carry, x_t):
        h, c = carry
        gates = x_t @ wih_t + h @ whh_t + b
        i = jax.nn.sigmoid(gates[:, 0 * H:1 * H])
        f = jax.nn.sigmoid(gates[:, 1 * H:2 * H])
        g = jnp.tanh(gates[:, 2 * H:3 * H])
        o = jax.nn.sigmoid(gates[:, 3 * H:4 * H])
        c = f * c + i * g
        h = o * jnp.tanh(c)
        return (h, c), h

    xs = jnp.transpose(x, (1, 0, 2))
    (h, c), ys = lax.scan(step_fn, (jnp.zeros((B, H)), jnp.zeros((B, H))), xs)
    return jnp.transpose(ys, (1, 0, 2)), (h[None], c[None])


# ---------------------------------- main ----------------------------------- #
if __name__ == "__main__":
    key = jax.random.PRNGKey(0)
    k_sig, k_par = jax.random.split(key)

    B, T, C, S = 2, 8, 4, 4          # signal (B, T, C, S) -> input_size = C*S = 16
    hidden_size = 32
    input_size = C * S

    signal = jax.random.normal(k_sig, (B, T, C, S), jnp.float32)
    params = init_params(k_par, input_size, hidden_size)

    output, (h_n, c_n) = encoder_rnn_forward(signal, params)
    jax.block_until_ready((output, h_n, c_n))

    ref_out, (ref_h, ref_c) = encoder_rnn_reference(signal, params)
    assert output.shape == (B, T, hidden_size)
    assert h_n.shape == (1, B, hidden_size) and c_n.shape == (1, B, hidden_size)
    # 5e-3 tolerance covers MXU default-precision (bf16-input, f32-accumulate)
    # rounding of the in-kernel dots vs. the f32 XLA reference, compounded
    # through T=8 steps (review correctness note); real bugs (gate order,
    # layout, bias) produce O(1e-1) errors and are still caught.
    assert jnp.allclose(output, ref_out, atol=5e-3, rtol=5e-3)
    assert jnp.allclose(h_n, ref_h, atol=5e-3, rtol=5e-3)
    assert jnp.allclose(c_n, ref_c, atol=5e-3, rtol=5e-3)

    print("KERNEL_OK")
</pallas_src>

<mosaic_0001>
module attributes {stable_mosaic.version = 11 : i64} {
  func.func @lstm_kernel(%arg0: memref<16x16xf32, #tpu.memory_space<vmem>>, %arg1: memref<16x128xf32, #tpu.memory_space<vmem>>, %arg2: memref<32x128xf32, #tpu.memory_space<vmem>>, %arg3: memref<1x128xf32, #tpu.memory_space<vmem>>, %arg4: memref<8x2x32xf32, #tpu.memory_space<vmem>>, %arg5: memref<2x32xf32, #tpu.memory_space<vmem>>, %arg6: memref<2x32xf32, #tpu.memory_space<vmem>>, %arg7: memref<16x128xf32, #tpu.memory_space<vmem>>) attributes {dimension_semantics = [], scalar_prefetch = 0 : i64, scratch_operands = 1 : i64, tpu.core_type = #tpu.core_type<tc>} {
    %c0 = arith.constant 0 : index
    %c0_0 = arith.constant 0 : index
    %0 = vector.load %arg0[%c0, %c0_0] : memref<16x16xf32, #tpu.memory_space<vmem>>, vector<16x16xf32>
    %c0_1 = arith.constant 0 : index
    %c0_2 = arith.constant 0 : index
    %1 = vector.load %arg1[%c0_1, %c0_2] : memref<16x128xf32, #tpu.memory_space<vmem>>, vector<16x128xf32>
    %cst = arith.constant dense<0.000000e+00> : vector<16x128xf32>
    %2 = tpu.matmul %0, %1, %cst {dimension_numbers = #tpu.dot_dimension_numbers<[1], [0], [0], [1], [0, 0, 1, 1], [], []>} : vector<16x16xf32>, vector<16x128xf32>, vector<16x128xf32> -> vector<16x128xf32>
    %c0_3 = arith.constant 0 : index
    %c0_4 = arith.constant 0 : index
    %3 = vector.load %arg3[%c0_3, %c0_4] : memref<1x128xf32, #tpu.memory_space<vmem>>, vector<1x128xf32>
    %4 = vector.broadcast %3 : vector<1x128xf32> to vector<16x128xf32>
    %5 = arith.addf %2, %4 : vector<16x128xf32>
    %c0_5 = arith.constant 0 : index
    %c0_6 = arith.constant 0 : index
    %6 = vector.load %arg7[%c0_5, %c0_6] : memref<16x128xf32, #tpu.memory_space<vmem>>, vector<16x128xf32>
    tpu.vector_store %arg7[%c0_5, %c0_6], %5 {strides = array<i32>} : memref<16x128xf32, #tpu.memory_space<vmem>>, vector<16x128xf32>,
    %c0_7 = arith.constant 0 : index
    %c0_8 = arith.constant 0 : index
    %7 = vector.load %arg2[%c0_7, %c0_8] : memref<32x128xf32, #tpu.memory_space<vmem>>, vector<32x128xf32>
    %cst_9 = arith.constant 0.000000e+00 : f32
    %8 = vector.broadcast %cst_9 : f32 to vector<2x32xf32>
    %cst_10 = arith.constant 0.000000e+00 : f32
    %9 = vector.broadcast %cst_10 : f32 to vector<2x32xf32>
    %c0_11 = arith.constant 0 : index
    %c0_12 = arith.constant 0 : index
    %10 = vector.load %arg7[%c0_11, %c0_12] : memref<16x128xf32, #tpu.memory_space<vmem>>, vector<2x128xf32>
    %cst_13 = arith.constant dense<0.000000e+00> : vector<2x128xf32>
    %11 = tpu.matmul %8, %7, %cst_13 {dimension_numbers = #tpu.dot_dimension_numbers<[1], [0], [0], [1], [0, 0, 1, 1], [], []>} : vector<2x32xf32>, vector<32x128xf32>, vector<2x128xf32> -> vector<2x128xf32>
    %12 = arith.addf %10, %11 : vector<2x128xf32>
    %13 = arith.negf %12 : vector<2x128xf32>
    %14 = math.exp %13 : vector<2x128xf32>
    %cst_14 = arith.constant 1.000000e+00 : f32
    %15 = vector.broadcast %cst_14 : f32 to vector<2x128xf32>
    %16 = arith.addf %15, %14 : vector<2x128xf32>
    %17 = arith.divf %15, %16 : vector<2x128xf32>
    %18 = math.tanh %12 : vector<2x128xf32>
    %19 = vector.extract_strided_slice %17 {offsets = [0, 0], sizes = [2, 32], strides = [1, 1]} : vector<2x128xf32> to vector<2x32xf32>
    %20 = vector.extract_strided_slice %17 {offsets = [0, 32], sizes = [2, 32], strides = [1, 1]} : vector<2x128xf32> to vector<2x32xf32>
    %21 = vector.extract_strided_slice %18 {offsets = [0, 64], sizes = [2, 32], strides = [1, 1]} : vector<2x128xf32> to vector<2x32xf32>
    %22 = vector.extract_strided_slice %17 {offsets = [0, 96], sizes = [2, 32], strides = [1, 1]} : vector<2x128xf32> to vector<2x32xf32>
    %23 = arith.mulf %20, %9 : vector<2x32xf32>
    %24 = arith.mulf %19, %21 : vector<2x32xf32>
    %25 = arith.addf %23, %24 : vector<2x32xf32>
    %26 = math.tanh %25 : vector<2x32xf32>
    %27 = arith.mulf %22, %26 : vector<2x32xf32>
    %c0_15 = arith.constant 0 : index
    %c0_16 = arith.constant 0 : index
    %c0_17 = arith.constant 0 : index
    %28 = vector.load %arg4[%c0_15, %c0_16, %c0_17] : memref<8x2x32xf32, #tpu.memory_space<vmem>>, vector<1x2x32xf32>
    %29 = vector.shape_cast %28 : vector<1x2x32xf32> to vector<2x32xf32>
    %30 = vector.shape_cast %27 : vector<2x32xf32> to vector<1x2x32xf32>
    tpu.vector_store %arg4[%c0_15, %c0_16, %c0_17], %30 {strides = array<i32>} : memref<8x2x32xf32, #tpu.memory_space<vmem>>, vector<1x2x32xf32>,
    %c2 = arith.constant 2 : index
    %c0_18 = arith.constant 0 : index
    %31 = vector.load %arg7[%c2, %c0_18] : memref<16x128xf32, #tpu.memory_space<vmem>>, vector<2x128xf32>
    %cst_19 = arith.constant dense<0.000000e+00> : vector<2x128xf32>
    %32 = tpu.matmul %27, %7, %cst_19 {dimension_numbers = #tpu.dot_dimension_numbers<[1], [0], [0], [1], [0, 0, 1, 1], [], []>} : vector<2x32xf32>, vector<32x128xf32>, vector<2x128xf32> -> vector<2x128xf32>
    %33 = arith.addf %31, %32 : vector<2x128xf32>
    %34 = arith.negf %33 : vector<2x128xf32>
    %35 = math.exp %34 : vector<2x128xf32>
    %cst_20 = arith.constant 1.000000e+00 : f32
    %36 = vector.broadcast %cst_20 : f32 to vector<2x128xf32>
    %37 = arith.addf %36, %35 : vector<2x128xf32>
    %38 = arith.divf %36, %37 : vector<2x128xf32>
    %39 = math.tanh %33 : vector<2x128xf32>
    %40 = vector.extract_strided_slice %38 {offsets = [0, 0], sizes = [2, 32], strides = [1, 1]} : vector<2x128xf32> to vector<2x32xf32>
    %41 = vector.extract_strided_slice %38 {offsets = [0, 32], sizes = [2, 32], strides = [1, 1]} : vector<2x128xf32> to vector<2x32xf32>
    %42 = vector.extract_strided_slice %39 {offsets = [0, 64], sizes = [2, 32], strides = [1, 1]} : vector<2x128xf32> to vector<2x32xf32>
    %43 = vector.extract_strided_slice %38 {offsets = [0, 96], sizes = [2, 32], strides = [1, 1]} : vector<2x128xf32> to vector<2x32xf32>
    %44 = arith.mulf %41, %25 : vector<2x32xf32>
    %45 = arith.mulf %40, %42 : vector<2x32xf32>
    %46 = arith.addf %44, %45 : vector<2x32xf32>
    %47 = math.tanh %46 : vector<2x32xf32>
    %48 = arith.mulf %43, %47 : vector<2x32xf32>
    %c1 = arith.constant 1 : index
    %c0_21 = arith.constant 0 : index
    %c0_22 = arith.constant 0 : index
    %49 = vector.load %arg4[%c1, %c0_21, %c0_22] : memref<8x2x32xf32, #tpu.memory_space<vmem>>, vector<1x2x32xf32>
    %50 = vector.shape_cast %49 : vector<1x2x32xf32> to vector<2x32xf32>
    %51 = vector.shape_cast %48 : vector<2x32xf32> to vector<1x2x32xf32>
    tpu.vector_store %arg4[%c1, %c0_21, %c0_22], %51 {strides = array<i32>} : memref<8x2x32xf32, #tpu.memory_space<vmem>>, vector<1x2x32xf32>,
    %c4 = arith.constant 4 : index
    %c0_23 = arith.constant 0 : index
    %52 = vector.load %arg7[%c4, %c0_23] : memref<16x128xf32, #tpu.memory_space<vmem>>, vector<2x128xf32>
    %cst_24 = arith.constant dense<0.000000e+00> : vector<2x128xf32>
    %53 = tpu.matmul %48, %7, %cst_24 {dimension_numbers = #tpu.dot_dimension_numbers<[1], [0], [0], [1], [0, 0, 1, 1], [], []>} : vector<2x32xf32>, vector<32x128xf32>, vector<2x128xf32> -> vector<2x128xf32>
    %54 = arith.addf %52, %53 : vector<2x128xf32>
    %55 = arith.negf %54 : vector<2x128xf32>
    %56 = math.exp %55 : vector<2x128xf32>
    %cst_25 = arith.constant 1.000000e+00 : f32
    %57 = vector.broadcast %cst_25 : f32 to vector<2x128xf32>
    %58 = arith.addf %57, %56 : vector<2x128xf32>
    %59 = arith.divf %57, %58 : vector<2x128xf32>
    %60 = math.tanh %54 : vector<2x128xf32>
    %61 = vector.extract_strided_slice %59 {offsets = [0, 0], sizes = [2, 32], strides = [1, 1]} : vector<2x128xf32> to vector<2x32xf32>
    %62 = vector.extract_strided_slice %59 {offsets = [0, 32], sizes = [2, 32], strides = [1, 1]} : vector<2x128xf32> to vector<2x32xf32>
    %63 = vector.extract_strided_slice %60 {offsets = [0, 64], sizes = [2, 32], strides = [1, 1]} : vector<2x128xf32> to vector<2x32xf32>
    %64 = vector.extract_strided_slice %59 {offsets = [0, 96], sizes = [2, 32], strides = [1, 1]} : vector<2x128xf32> to vector<2x32xf32>
    %65 = arith.mulf %62, %46 : vector<2x32xf32>
    %66 = arith.mulf %61, %63 : vector<2x32xf32>
    %67 = arith.addf %65, %66 : vector<2x32xf32>
    %68 = math.tanh %67 : vector<2x32xf32>
    %69 = arith.mulf %64, %68 : vector<2x32xf32>
    %c2_26 = arith.constant 2 : index
    %c0_27 = arith.constant 0 : index
    %c0_28 = arith.constant 0 : index
    %70 = vector.load %arg4[%c2_26, %c0_27, %c0_28] : memref<8x2x32xf32, #tpu.memory_space<vmem>>, vector<1x2x32xf32>
    %71 = vector.shape_cast %70 : vector<1x2x32xf32> to vector<2x32xf32>
    %72 = vector.shape_cast %69 : vector<2x32xf32> to vector<1x2x32xf32>
    tpu.vector_store %arg4[%c2_26, %c0_27, %c0_28], %72 {strides = array<i32>} : memref<8x2x32xf32, #tpu.memory_space<vmem>>, vector<1x2x32xf32>,
    %c6 = arith.constant 6 : index
    %c0_29 = arith.constant 0 : index
    %73 = vector.load %arg7[%c6, %c0_29] : memref<16x128xf32, #tpu.memory_space<vmem>>, vector<2x128xf32>
    %cst_30 = arith.constant dense<0.000000e+00> : vector<2x128xf32>
    %74 = tpu.matmul %69, %7, %cst_30 {dimension_numbers = #tpu.dot_dimension_numbers<[1], [0], [0], [1], [0, 0, 1, 1], [], []>} : vector<2x32xf32>, vector<32x128xf32>, vector<2x128xf32> -> vector<2x128xf32>
    %75 = arith.addf %73, %74 : vector<2x128xf32>
    %76 = arith.negf %75 : vector<2x128xf32>
    %77 = math.exp %76 : vector<2x128xf32>
    %cst_31 = arith.constant 1.000000e+00 : f32
    %78 = vector.broadcast %cst_31 : f32 to vector<2x128xf32>
    %79 = arith.addf %78, %77 : vector<2x128xf32>
    %80 = arith.divf %78, %79 : vector<2x128xf32>
    %81 = math.tanh %75 : vector<2x128xf32>
    %82 = vector.extract_strided_slice %80 {offsets = [0, 0], sizes = [2, 32], strides = [1, 1]} : vector<2x128xf32> to vector<2x32xf32>
    %83 = vector.extract_strided_slice %80 {offsets = [0, 32], sizes = [2, 32], strides = [1, 1]} : vector<2x128xf32> to vector<2x32xf32>
    %84 = vector.extract_strided_slice %81 {offsets = [0, 64], sizes = [2, 32], strides = [1, 1]} : vector<2x128xf32> to vector<2x32xf32>
    %85 = vector.extract_strided_slice %80 {offsets = [0, 96], sizes = [2, 32], strides = [1, 1]} : vector<2x128xf32> to vector<2x32xf32>
    %86 = arith.mulf %83, %67 : vector<2x32xf32>
    %87 = arith.mulf %82, %84 : vector<2x32xf32>
    %88 = arith.addf %86, %87 : vector<2x32xf32>
    %89 = math.tanh %88 : vector<2x32xf32>
    %90 = arith.mulf %85, %89 : vector<2x32xf32>
    %c3 = arith.constant 3 : index
    %c0_32 = arith.constant 0 : index
    %c0_33 = arith.constant 0 : index
    %91 = vector.load %arg4[%c3, %c0_32, %c0_33] : memref<8x2x32xf32, #tpu.memory_space<vmem>>, vector<1x2x32xf32>
    %92 = vector.shape_cast %91 : vector<1x2x32xf32> to vector<2x32xf32>
    %93 = vector.shape_cast %90 : vector<2x32xf32> to vector<1x2x32xf32>
    tpu.vector_store %arg4[%c3, %c0_32, %c0_33], %93 {strides = array<i32>} : memref<8x2x32xf32, #tpu.memory_space<vmem>>, vector<1x2x32xf32>,
    %c8 = arith.constant 8 : index
    %c0_34 = arith.constant 0 : index
    %94 = vector.load %arg7[%c8, %c0_34] : memref<16x128xf32, #tpu.memory_space<vmem>>, vector<2x128xf32>
    %cst_35 = arith.constant dense<0.000000e+00> : vector<2x128xf32>
    %95 = tpu.matmul %90, %7, %cst_35 {dimension_numbers = #tpu.dot_dimension_numbers<[1], [0], [0], [1], [0, 0, 1, 1], [], []>} : vector<2x32xf32>, vector<32x128xf32>, vector<2x128xf32> -> vector<2x128xf32>
    %96 = arith.addf %94, %95 : vector<2x128xf32>
    %97 = arith.negf %96 : vector<2x128xf32>
    %98 = math.exp %97 : vector<2x128xf32>
    %cst_36 = arith.constant 1.000000e+00 : f32
    %99 = vector.broadcast %cst_36 : f32 to vector<2x128xf32>
    %100 = arith.addf %99, %98 : vector<2x128xf32>
    %101 = arith.divf %99, %100 : vector<2x128xf32>
    %102 = math.tanh %96 : vector<2x128xf32>
    %103 = vector.extract_strided_slice %101 {offsets = [0, 0], sizes = [2, 32], strides = [1, 1]} : vector<2x128xf32> to vector<2x32xf32>
    %104 = vector.extract_strided_slice %101 {offsets = [0, 32], sizes = [2, 32], strides = [1, 1]} : vector<2x128xf32> to vector<2x32xf32>
    %105 = vector.extract_strided_slice %102 {offsets = [0, 64], sizes = [2, 32], strides = [1, 1]} : vector<2x128xf32> to vector<2x32xf32>
    %106 = vector.extract_strided_slice %101 {offsets = [0, 96], sizes = [2, 32], strides = [1, 1]} : vector<2x128xf32> to vector<2x32xf32>
    %107 = arith.mulf %104, %88 : vector<2x32xf32>
    %108 = arith.mulf %103, %105 : vector<2x32xf32>
    %109 = arith.addf %107, %108 : vector<2x32xf32>
    %110 = math.tanh %109 : vector<2x32xf32>
    %111 = arith.mulf %106, %110 : vector<2x32xf32>
    %c4_37 = arith.constant 4 : index
    %c0_38 = arith.constant 0 : index
    %c0_39 = arith.constant 0 : index
    %112 = vector.load %arg4[%c4_37, %c0_38, %c0_39] : memref<8x2x32xf32, #tpu.memory_space<vmem>>, vector<1x2x32xf32>
    %113 = vector.shape_cast %112 : vector<1x2x32xf32> to vector<2x32xf32>
    %114 = vector.shape_cast %111 : vector<2x32xf32> to vector<1x2x32xf32>
    tpu.vector_store %arg4[%c4_37, %c0_38, %c0_39], %114 {strides = array<i32>} : memref<8x2x32xf32, #tpu.memory_space<vmem>>, vector<1x2x32xf32>,
    %c10 = arith.constant 10 : index
    %c0_40 = arith.constant 0 : index
    %115 = vector.load %arg7[%c10, %c0_40] : memref<16x128xf32, #tpu.memory_space<vmem>>, vector<2x128xf32>
    %cst_41 = arith.constant dense<0.000000e+00> : vector<2x128xf32>
    %116 = tpu.matmul %111, %7, %cst_41 {dimension_numbers = #tpu.dot_dimension_numbers<[1], [0], [0], [1], [0, 0, 1, 1], [], []>} : vector<2x32xf32>, vector<32x128xf32>, vector<2x128xf32> -> vector<2x128xf32>
    %117 = arith.addf %115, %116 : vector<2x128xf32>
    %118 = arith.negf %117 : vector<2x128xf32>
    %119 = math.exp %118 : vector<2x128xf32>
    %cst_42 = arith.constant 1.000000e+00 : f32
    %120 = vector.broadcast %cst_42 : f32 to vector<2x128xf32>
    %121 = arith.addf %120, %119 : vector<2x128xf32>
    %122 = arith.divf %120, %121 : vector<2x128xf32>
    %123 = math.tanh %117 : vector<2x128xf32>
    %124 = vector.extract_strided_slice %122 {offsets = [0, 0], sizes = [2, 32], strides = [1, 1]} : vector<2x128xf32> to vector<2x32xf32>
    %125 = vector.extract_strided_slice %122 {offsets = [0, 32], sizes = [2, 32], strides = [1, 1]} : vector<2x128xf32> to vector<2x32xf32>
    %126 = vector.extract_strided_slice %123 {offsets = [0, 64], sizes = [2, 32], strides = [1, 1]} : vector<2x128xf32> to vector<2x32xf32>
    %127 = vector.extract_strided_slice %122 {offsets = [0, 96], sizes = [2, 32], strides = [1, 1]} : vector<2x128xf32> to vector<2x32xf32>
    %128 = arith.mulf %125, %109 : vector<2x32xf32>
    %129 = arith.mulf %124, %126 : vector<2x32xf32>
    %130 = arith.addf %128, %129 : vector<2x32xf32>
    %131 = math.tanh %130 : vector<2x32xf32>
    %132 = arith.mulf %127, %131 : vector<2x32xf32>
    %c5 = arith.constant 5 : index
    %c0_43 = arith.constant 0 : index
    %c0_44 = arith.constant 0 : index
    %133 = vector.load %arg4[%c5, %c0_43, %c0_44] : memref<8x2x32xf32, #tpu.memory_space<vmem>>, vector<1x2x32xf32>
    %134 = vector.shape_cast %133 : vector<1x2x32xf32> to vector<2x32xf32>
    %135 = vector.shape_cast %132 : vector<2x32xf32> to vector<1x2x32xf32>
    tpu.vector_store %arg4[%c5, %c0_43, %c0_44], %135 {strides = array<i32>} : memref<8x2x32xf32, #tpu.memory_space<vmem>>, vector<1x2x32xf32>,
    %c12 = arith.constant 12 : index
    %c0_45 = arith.constant 0 : index
    %136 = vector.load %arg7[%c12, %c0_45] : memref<16x128xf32, #tpu.memory_space<vmem>>, vector<2x128xf32>
    %cst_46 = arith.constant dense<0.000000e+00> : vector<2x128xf32>
    %137 = tpu.matmul %132, %7, %cst_46 {dimension_numbers = #tpu.dot_dimension_numbers<[1], [0], [0], [1], [0, 0, 1, 1], [], []>} : vector<2x32xf32>, vector<32x128xf32>, vector<2x128xf32> -> vector<2x128xf32>
    %138 = arith.addf %136, %137 : vector<2x128xf32>
    %139 = arith.negf %138 : vector<2x128xf32>
    %140 = math.exp %139 : vector<2x128xf32>
    %cst_47 = arith.constant 1.000000e+00 : f32
    %141 = vector.broadcast %cst_47 : f32 to vector<2x128xf32>
    %142 = arith.addf %141, %140 : vector<2x128xf32>
    %143 = arith.divf %141, %142 : vector<2x128xf32>
    %144 = math.tanh %138 : vector<2x128xf32>
    %145 = vector.extract_strided_slice %143 {offsets = [0, 0], sizes = [2, 32], strides = [1, 1]} : vector<2x128xf32> to vector<2x32xf32>
    %146 = vector.extract_strided_slice %143 {offsets = [0, 32], sizes = [2, 32], strides = [1, 1]} : vector<2x128xf32> to vector<2x32xf32>
    %147 = vector.extract_strided_slice %144 {offsets = [0, 64], sizes = [2, 32], strides = [1, 1]} : vector<2x128xf32> to vector<2x32xf32>
    %148 = vector.extract_strided_slice %143 {offsets = [0, 96], sizes = [2, 32], strides = [1, 1]} : vector<2x128xf32> to vector<2x32xf32>
    %149 = arith.mulf %146, %130 : vector<2x32xf32>
    %150 = arith.mulf %145, %147 : vector<2x32xf32>
    %151 = arith.addf %149, %150 : vector<2x32xf32>
    %152 = math.tanh %151 : vector<2x32xf32>
    %153 = arith.mulf %148, %152 : vector<2x32xf32>
    %c6_48 = arith.constant 6 : index
    %c0_49 = arith.constant 0 : index
    %c0_50 = arith.constant 0 : index
    %154 = vector.load %arg4[%c6_48, %c0_49, %c0_50] : memref<8x2x32xf32, #tpu.memory_space<vmem>>, vector<1x2x32xf32>
    %155 = vector.shape_cast %154 : vector<1x2x32xf32> to vector<2x32xf32>
    %156 = vector.shape_cast %153 : vector<2x32xf32> to vector<1x2x32xf32>
    tpu.vector_store %arg4[%c6_48, %c0_49, %c0_50], %156 {strides = array<i32>} : memref<8x2x32xf32, #tpu.memory_space<vmem>>, vector<1x2x32xf32>,
    %c14 = arith.constant 14 : index
    %c0_51 = arith.constant 0 : index
    %157 = vector.load %arg7[%c14, %c0_51] : memref<16x128xf32, #tpu.memory_space<vmem>>, vector<2x128xf32>
    %cst_52 = arith.constant dense<0.000000e+00> : vector<2x128xf32>
    %158 = tpu.matmul %153, %7, %cst_52 {dimension_numbers = #tpu.dot_dimension_numbers<[1], [0], [0], [1], [0, 0, 1, 1], [], []>} : vector<2x32xf32>, vector<32x128xf32>, vector<2x128xf32> -> vector<2x128xf32>
    %159 = arith.addf %157, %158 : vector<2x128xf32>
    %160 = arith.negf %159 : vector<2x128xf32>
    %161 = math.exp %160 : vector<2x128xf32>
    %cst_53 = arith.constant 1.000000e+00 : f32
    %162 = vector.broadcast %cst_53 : f32 to vector<2x128xf32>
    %163 = arith.addf %162, %161 : vector<2x128xf32>
    %164 = arith.divf %162, %163 : vector<2x128xf32>
    %165 = math.tanh %159 : vector<2x128xf32>
    %166 = vector.extract_strided_slice %164 {offsets = [0, 0], sizes = [2, 32], strides = [1, 1]} : vector<2x128xf32> to vector<2x32xf32>
    %167 = vector.extract_strided_slice %164 {offsets = [0, 32], sizes = [2, 32], strides = [1, 1]} : vector<2x128xf32> to vector<2x32xf32>
    %168 = vector.extract_strided_slice %165 {offsets = [0, 64], sizes = [2, 32], strides = [1, 1]} : vector<2x128xf32> to vector<2x32xf32>
    %169 = vector.extract_strided_slice %164 {offsets = [0, 96], sizes = [2, 32], strides = [1, 1]} : vector<2x128xf32> to vector<2x32xf32>
    %170 = arith.mulf %167, %151 : vector<2x32xf32>
    %171 = arith.mulf %166, %168 : vector<2x32xf32>
    %172 = arith.addf %170, %171 : vector<2x32xf32>
    %173 = math.tanh %172 : vector<2x32xf32>
    %174 = arith.mulf %169, %173 : vector<2x32xf32>
    %c7 = arith.constant 7 : index
    %c0_54 = arith.constant 0 : index
    %c0_55 = arith.constant 0 : index
    %175 = vector.load %arg4[%c7, %c0_54, %c0_55] : memref<8x2x32xf32, #tpu.memory_space<vmem>>, vector<1x2x32xf32>
    %176 = vector.shape_cast %175 : vector<1x2x32xf32> to vector<2x32xf32>
    %177 = vector.shape_cast %174 : vector<2x32xf32> to vector<1x2x32xf32>
    tpu.vector_store %arg4[%c7, %c0_54, %c0_55], %177 {strides = array<i32>} : memref<8x2x32xf32, #tpu.memory_space<vmem>>, vector<1x2x32xf32>,
    %c0_56 = arith.constant 0 : index
    %c0_57 = arith.constant 0 : index
    %178 = vector.load %arg5[%c0_56, %c0_57] : memref<2x32xf32, #tpu.memory_space<vmem>>, vector<2x32xf32>
    tpu.vector_store %arg5[%c0_56, %c0_57], %174 {strides = array<i32>} : memref<2x32xf32, #tpu.memory_space<vmem>>, vector<2x32xf32>,
    %c0_58 = arith.constant 0 : index
    %c0_59 = arith.constant 0 : index
    %179 = vector.load %arg6[%c0_58, %c0_59] : memref<2x32xf32, #tpu.memory_space<vmem>>, vector<2x32xf32>
    tpu.vector_store %arg6[%c0_58, %c0_59], %172 {strides = array<i32>} : memref<2x32xf32, #tpu.memory_space<vmem>>, vector<2x32xf32>,
    return
  }
}

</mosaic_0001>

<bundles_post_ra>
// kernel: encoder_rnn_forward.1
= control target key start
LH: loop header
LB: loop body
LE: loop exit
PB: predicated region body
PF: predicated region fallthrough
CT: control target
= control target key end

     0   :  { %12 = vsyncpa [#allocation4], 0  ;;  %vm30_vm0 = vcmask 130048   ;;  %s946_s0 = inlined_call_operand.vmem [shape: f32[16,16], index: 0, kind: input, shape index: {}]   ;;  %s947_s1 = inlined_call_operand.vmem [shape: f32[16,128], index: 1, kind: input, shape index: {}]   ;;  %s948_s2 = inlined_call_operand.vmem [shape: f32[32,128], index: 2, kind: input, shape index: {}]   ;;  %s949_s3 = inlined_call_operand.vmem [shape: f32[1,128], index: 3, kind: input, shape index: {}]   ;;  %s950_s4 = inlined_call_operand.vmem [shape: f32[8,2,32], index: 4, kind: output, shape index: {0}]   ;;  %s951_s5 = inlined_call_operand.hbm [shape: f32[2,32], index: 5, kind: output, shape index: {1}]   ;;  %s952_s6 = inlined_call_operand.hbm [shape: f32[2,32], index: 6, kind: output, shape index: {2}]  }
   0x1   :  { %v25_v0 = vld [vmem:[%s947_s1 + $0x8] sm:$0xff]  ;;  %v24_v1 = vld [vmem:[%s947_s1] sm:$0xff]  ;;  %v65_v3 = vld [vmem:[%s948_s2 + $0x18] sm:$0xff] }
   0x2   :  { %51 = vmatpush.msra.mxu0 %v25_v0  ;;  %v22_v2 = vld [vmem:[%s946_s0] sm:$0xff]  ;;  %v64_v4 = vld [vmem:[%s948_s2 + $0x10] sm:$0xff]  ;;  %83 = vmatpush.msra.mxu1 %v65_v3  ;;  %v63_v5 = vld [vmem:[%s948_s2 + $0x8] sm:$0xff] }
   0x3   :  { %150 = vmatpush.msra.mxu2 %v65_v3  ;;  %217 = vmatpush.msra.mxu3 %v65_v3 }
   0x4   :  { %52 = vmatpush.msra.mxu0 %v24_v1 }
   0x5   :  { %13 = vsyncpa [#allocation6], 0  ;;  %646 = vmatmul.msk.f32.vlgmr.msra.gmra.mxu0 %vm30_vm0, %v22_v2  ;;  %84 = vmatpush.msra.mxu1 %v64_v4  ;;  %v62_v6 = vld [vmem:[%s948_s2] sm:$0xff]  ;;  %v793_v7 = vmov 0.0   ;;  %s794_s11 = smov 64   ;;  %vm133_vm5 = vcmask 254976  }
   0x6   :  { %151 = vmatpush.msra.mxu2 %v64_v4  ;;  %218 = vmatpush.msra.mxu3 %v64_v4  ;;  %v859_v8 = vld [vmem:[%s949_s3] ss:$0 sm:$0xff]  ;;  %s795_s3 = smov 32   ;;  %vm67_vm6 = vcmask 261120   ;;  %s796_s27 = smov 96  }
   0x7   :  { %85 = vmatpush.msra.mxu1 %v63_v5  ;;  %485 = vmatpush.msrb.mxu0 %v65_v3  ;;  %s797_s28 = smov [#allocation5]   ;;  %s630_s8 = sshll.u32 %s952_s6, 4  ;;  %s631_s8 = int_to_ptr.hbm [resolvable:$true] %s630_s8 }
   0x8   :  { %152 = vmatpush.msra.mxu2 %v63_v5  ;;  %219 = vmatpush.msra.mxu3 %v63_v5  ;;  %s628_s29 = sshll.u32 %s797_s28, 4  ;;  %s798_s1 = smov [#allocation3]   ;;  %s629_s29 = int_to_ptr.vmem [resolvable:$true] %s628_s29 }
   0x9   :  { %86 = vmatpush.msra.mxu1 %v62_v6  ;;  %486 = vmatpush.msrb.mxu0 %v64_v4  ;;  %s617_s9 = sshll.u32 %s798_s1, 4  ;;  %s618_s9 = int_to_ptr.vmem [resolvable:$true] %s617_s9 }
   0xa   :  { %87 = vmatmul.f32.vlgmr.msra.gmra.mxu1 %v793_v7  ;;  %153 = vmatpush.msra.mxu2 %v62_v6 }
   0xb   :  { %220 = vmatpush.msra.mxu3 %v62_v6  ;;  %284 = vmatpush.msrb.mxu1 %v65_v3 }
   0xc   :  { %351 = vmatpush.msrb.mxu2 %v65_v3  ;;  %487 = vmatpush.msrb.mxu0 %v63_v5 }
   0xd   :  { %418 = vmatpush.msrb.mxu3 %v65_v3  ;;  %285 = vmatpush.msrb.mxu1 %v64_v4 }
   0xe   :  { %352 = vmatpush.msrb.mxu2 %v64_v4  ;;  %488 = vmatpush.msrb.mxu0 %v62_v6 }
   0xf   :  { %419 = vmatpush.msrb.mxu3 %v64_v4  ;;  %286 = vmatpush.msrb.mxu1 %v63_v5 }
  0x10   :  { %353 = vmatpush.msrb.mxu2 %v63_v5 }
  0x11   :  { %420 = vmatpush.msrb.mxu3 %v63_v5  ;;  %287 = vmatpush.msrb.mxu1 %v62_v6 }
  0x12   :  { %354 = vmatpush.msrb.mxu2 %v62_v6 }
  0x13   :  { %421 = vmatpush.msrb.mxu3 %v62_v6  ;;  %552 = vmatpush.msra.mxu1 %v65_v3 }
  0x15   :  { %553 = vmatpush.msra.mxu1 %v64_v4 }
  0x17   :  { %554 = vmatpush.msra.mxu1 %v63_v5 }
  0x19   :  { %555 = vmatpush.msra.mxu1 %v62_v6 }
  0x82   :  { %v54_v9 = vpop.f32.mrf.mxu0 }
  0x83   :  { %v55_v10 = vadd.f32 %v859_v8, %v54_v9 }
  0x85   :  { %60 = vst [vmem:[#allocation2] sm:$0xff] %v55_v10 }
  0x87   :  { %v88_v11 = vpop.f32.mrf.mxu1 }
  0x8c   :  { %v66_v12 = vld [vmem:[#allocation2] sm:$0x3]  ;;  %v135_v37 = vld [vmem:[#allocation2 + $0x2] sm:$0x3]  ;;  %v202_v63 = vld [vmem:[#allocation2 + $0x4] sm:$0x3] }
  0x8d   :  { %v91_v13 = vadd.f32 %v88_v11, %v66_v12 }
  0x8f   :  { %677 = vtanh.f32 %v91_v13  ;;  %v648_v15 = vmul.f32 -1.442695, %v91_v13 }
  0x91   :  { %679 = vpow2.f32 %v648_v15 }
  0x95   :  { %v678_v14 = vpop.eup %677 }
  0x96   :  { %114 = vrot.lane.b32.xlu0 %v678_v14, %s794_s11 }
  0x97   :  { %v680_v16 = vpop.eup %679 }
  0x98   :  { %v95_v17 = vadd.f32 1.0, %v680_v16 }
  0x9a   :  { %681 = vrcp.f32 %v95_v17  ;;  %v107_v23 = vand.u32 2147483648, %v95_v17  ;;  %vm101_vm2 = vweird.f32 %v95_v17  ;;  %v105_v24 = vand.u32 2147483647, %v95_v17 }
  0x9c   :  { %v108_v26 = vor.u32 1.1754944e-38, %v107_v23  ;;  %vm106_vm4 = vcmp.eq.f32.partialorder %v105_v24, 8.507059e+37 }
  0xa0   :  { %v682_v18 = vpop.eup %681 }
  0xa1   :  { %v97_v19 = vmul.f32 %v682_v18, %v95_v17  ;;  %vm102_vm1 = vweird.f32 %v682_v18 }
  0xa2   :  { %vm103_vm3 = vmor %vm101_vm2, %vm102_vm1 }
  0xa3   :  { %v98_v20 = vsub.f32 1.0, %v97_v19 }
  0xa5   :  { %v99_v21 = vmul.f32 %v682_v18, %v98_v20 }
  0xa7   :  { %v100_v22 = vadd.f32 %v682_v18, %v99_v21 }
  0xa9   :  { %v104_v25 = vsel %vm103_vm3, %v682_v18, %v100_v22 }
  0xaa   :  { %v109_v28 = vsel %vm106_vm4, %v108_v26, %v104_v25  ;;  %v269_v26 = vld [vmem:[#allocation2 + $0x6] sm:$0x3] }
  0xab   :  { %v112_v30 = vmul.f32 0.0, %v109_v28 }
 0x108   :  { %v115_v27 = vpop.permute.xlu0 %114 }
 0x109   :  { %v117_v29 = vmul.f32 %v115_v27, %v109_v28 }
 0x10b   :  { %119 = vrot.lane.b32.xlu0 %v117_v29, %s795_s3 }
 0x17d   :  { %v120_v31 = vpop.permute.xlu0 %119 }
 0x17e   :  { %v122_v32 = vadd.f32 %v120_v31, %v112_v30 }
 0x180   :  { %683 = vtanh.f32 %v122_v32 }
 0x186   :  { %v684_v33 = vpop.eup %683 }
 0x187   :  { %125 = vrot.lane.b32.xlu1 %v684_v33, %s794_s11 }
 0x1f9   :  { %v126_v34 = vpop.permute.xlu1 %125 }
 0x1fa   :  { %v128_v35 = vmul.f32 %v126_v34, %v109_v28 }
 0x1fc   :  { %130 = vrot.lane.b32.xlu1 %v128_v35, %s795_s3 }
 0x26e   :  { %v131_v36 = vpop.permute.xlu1 %130 }
 0x26f   :  { %134 = vst.msk [vmem:[%s950_s4] sm:$0x3] %vm133_vm5, %v131_v36  ;;  %649 = vmatmul.msk.f32.vlgmr.msra.gmra.mxu2 %vm67_vm6, %v131_v36 }
 0x2f2   :  { %v155_v38 = vpop.f32.mrf.mxu2 }
 0x2f3   :  { %v158_v39 = vadd.f32 %v155_v38, %v135_v37 }
 0x2f5   :  { %685 = vtanh.f32 %v158_v39  ;;  %v650_v41 = vmul.f32 -1.442695, %v158_v39 }
 0x2f7   :  { %687 = vpow2.f32 %v650_v41 }
 0x2fb   :  { %v686_v40 = vpop.eup %685 }
 0x2fc   :  { %181 = vrot.lane.b32.xlu2 %v686_v40, %s794_s11 }
 0x2fd   :  { %v688_v42 = vpop.eup %687 }
 0x2fe   :  { %v162_v43 = vadd.f32 1.0, %v688_v42 }
 0x300   :  { %689 = vrcp.f32 %v162_v43  ;;  %v174_v49 = vand.u32 2147483648, %v162_v43  ;;  %vm168_vm8 = vweird.f32 %v162_v43  ;;  %v172_v50 = vand.u32 2147483647, %v162_v43 }
 0x302   :  { %v175_v52 = vor.u32 1.1754944e-38, %v174_v49  ;;  %vm173_vm10 = vcmp.eq.f32.partialorder %v172_v50, 8.507059e+37  ;;  %v23_v49 = vld [vmem:[%s946_s0 + $0x8] sm:$0xff] }
 0x303   :  { %647 = vmatmul.msk.f32.gmra.mxu0 %vm30_vm0, %v23_v49 }
 0x306   :  { %v690_v44 = vpop.eup %689 }
 0x307   :  { %v164_v45 = vmul.f32 %v690_v44, %v162_v43  ;;  %vm169_vm7 = vweird.f32 %v690_v44 }
 0x308   :  { %vm170_vm9 = vmor %vm168_vm8, %vm169_vm7 }
 0x309   :  { %v165_v46 = vsub.f32 1.0, %v164_v45 }
 0x30b   :  { %v166_v47 = vmul.f32 %v690_v44, %v165_v46 }
 0x30d   :  { %v167_v48 = vadd.f32 %v690_v44, %v166_v47 }
 0x30f   :  { %v171_v51 = vsel %vm170_vm9, %v690_v44, %v167_v48 }
 0x310   :  { %v176_v54 = vsel %vm173_vm10, %v175_v52, %v171_v51 }
 0x311   :  { %v179_v56 = vmul.f32 %v176_v54, %v122_v32 }
 0x356   :  { %v182_v53 = vpop.permute.xlu2 %181 }
 0x357   :  { %v184_v55 = vmul.f32 %v182_v53, %v176_v54 }
 0x359   :  { %186 = vrot.lane.b32.xlu2 %v184_v55, %s795_s3 }
 0x380   :  { %v57_v52 = vpop.f32.mrf.mxu0 }
 0x381   :  { %v58_v53 = vadd.f32 %v859_v8, %v57_v52 }
 0x383   :  { %61 = vst [vmem:[#allocation2 + $0x8] sm:$0xff] %v58_v53 }
 0x38a   :  { %v336_v55 = vld [vmem:[#allocation2 + $0x8] sm:$0x3] }
 0x3b3   :  { %v187_v57 = vpop.permute.xlu2 %186 }
 0x3b4   :  { %v189_v58 = vadd.f32 %v187_v57, %v179_v56 }
 0x3b6   :  { %691 = vtanh.f32 %v189_v58 }
 0x3bc   :  { %v692_v59 = vpop.eup %691 }
 0x3bd   :  { %192 = vrot.lane.b32.xlu0 %v692_v59, %s794_s11 }
 0x42f   :  { %v193_v60 = vpop.permute.xlu0 %192 }
 0x430   :  { %v195_v61 = vmul.f32 %v193_v60, %v176_v54 }
 0x432   :  { %197 = vrot.lane.b32.xlu1 %v195_v61, %s795_s3 }
 0x4a4   :  { %v198_v62 = vpop.permute.xlu1 %197 }
 0x4a5   :  { %651 = vst.msk [vmem:[%s950_s4 + $0x2] sm:$0x3] %vm133_vm5, %v198_v62  ;;  %652 = vmatmul.msk.f32.vlgmr.msra.gmra.mxu3 %vm67_vm6, %v198_v62 }
 0x528   :  { %v222_v0 = vpop.f32.mrf.mxu3 }
 0x529   :  { %v225_v1 = vadd.f32 %v222_v0, %v202_v63 }
 0x52b   :  { %693 = vtanh.f32 %v225_v1  ;;  %v653_v3 = vmul.f32 -1.442695, %v225_v1 }
 0x52d   :  { %695 = vpow2.f32 %v653_v3 }
 0x531   :  { %v694_v2 = vpop.eup %693 }
 0x532   :  { %248 = vrot.lane.b32.xlu2 %v694_v2, %s794_s11 }
 0x533   :  { %v696_v4 = vpop.eup %695 }
 0x534   :  { %v229_v5 = vadd.f32 1.0, %v696_v4 }
 0x536   :  { %697 = vrcp.f32 %v229_v5  ;;  %v241_v12 = vand.u32 2147483648, %v229_v5  ;;  %vm235_vm12 = vweird.f32 %v229_v5  ;;  %v239_v13 = vand.u32 2147483647, %v229_v5 }
 0x538   :  { %v242_v15 = vor.u32 1.1754944e-38, %v241_v12  ;;  %vm240_vm14 = vcmp.eq.f32.partialorder %v239_v13, 8.507059e+37 }
 0x53c   :  { %v698_v6 = vpop.eup %697 }
 0x53d   :  { %v231_v7 = vmul.f32 %v698_v6, %v229_v5  ;;  %vm236_vm11 = vweird.f32 %v698_v6 }
 0x53e   :  { %vm237_vm13 = vmor %vm235_vm12, %vm236_vm11 }
 0x53f   :  { %v232_v9 = vsub.f32 1.0, %v231_v7 }
 0x541   :  { %v233_v10 = vmul.f32 %v698_v6, %v232_v9 }
 0x543   :  { %v234_v11 = vadd.f32 %v698_v6, %v233_v10 }
 0x545   :  { %v238_v14 = vsel %vm237_vm13, %v698_v6, %v234_v11 }
 0x546   :  { %v243_v17 = vsel %vm240_vm14, %v242_v15, %v238_v14 }
 0x547   :  { %v246_v19 = vmul.f32 %v243_v17, %v189_v58 }
 0x58c   :  { %v249_v16 = vpop.permute.xlu2 %248 }
 0x58d   :  { %v251_v18 = vmul.f32 %v249_v16, %v243_v17 }
 0x58f   :  { %253 = vrot.lane.b32.xlu0 %v251_v18, %s795_s3 }
 0x601   :  { %v254_v20 = vpop.permute.xlu0 %253 }
 0x602   :  { %v256_v21 = vadd.f32 %v254_v20, %v246_v19 }
 0x604   :  { %699 = vtanh.f32 %v256_v21 }
 0x60a   :  { %v700_v22 = vpop.eup %699 }
 0x60b   :  { %259 = vrot.lane.b32.xlu1 %v700_v22, %s794_s11 }
 0x67d   :  { %v260_v23 = vpop.permute.xlu1 %259 }
 0x67e   :  { %v262_v24 = vmul.f32 %v260_v23, %v243_v17  ;;  %v403_v17 = vld [vmem:[#allocation2 + $0xa] sm:$0x3] }
 0x680   :  { %264 = vrot.lane.b32.xlu2 %v262_v24, %s795_s3 }
 0x6da   :  { %v265_v25 = vpop.permute.xlu2 %264 }
 0x6db   :  { %654 = vst.msk [vmem:[%s950_s4 + $0x4] sm:$0x3] %vm133_vm5, %v265_v25  ;;  %655 = vmatmul.msk.f32.vlgmr.msrb.gmra.mxu1 %vm67_vm6, %v265_v25 }
 0x758   :  { %v289_v27 = vpop.f32.mrf.mxu1 }
 0x759   :  { %v292_v28 = vadd.f32 %v289_v27, %v269_v26 }
 0x75b   :  { %701 = vtanh.f32 %v292_v28  ;;  %v656_v30 = vmul.f32 -1.442695, %v292_v28 }
 0x75d   :  { %703 = vpow2.f32 %v656_v30 }
 0x761   :  { %v702_v29 = vpop.eup %701 }
 0x762   :  { %315 = vrot.lane.b32.xlu0 %v702_v29, %s794_s11 }
 0x763   :  { %v704_v31 = vpop.eup %703 }
 0x764   :  { %v296_v32 = vadd.f32 1.0, %v704_v31 }
 0x766   :  { %705 = vrcp.f32 %v296_v32  ;;  %v308_v38 = vand.u32 2147483648, %v296_v32  ;;  %vm302_vm1 = vweird.f32 %v296_v32  ;;  %v306_v39 = vand.u32 2147483647, %v296_v32 }
 0x768   :  { %v309_v41 = vor.u32 1.1754944e-38, %v308_v38  ;;  %vm307_vm3 = vcmp.eq.f32.partialorder %v306_v39, 8.507059e+37 }
 0x76c   :  { %v706_v33 = vpop.eup %705 }
 0x76d   :  { %v298_v34 = vmul.f32 %v706_v33, %v296_v32  ;;  %vm303_vm15 = vweird.f32 %v706_v33 }
 0x76e   :  { %vm304_vm2 = vmor %vm302_vm1, %vm303_vm15 }
 0x76f   :  { %v299_v35 = vsub.f32 1.0, %v298_v34 }
 0x771   :  { %v300_v36 = vmul.f32 %v706_v33, %v299_v35 }
 0x773   :  { %v301_v37 = vadd.f32 %v706_v33, %v300_v36 }
 0x775   :  { %v305_v40 = vsel %vm304_vm2, %v706_v33, %v301_v37 }
 0x776   :  { %v310_v43 = vsel %vm307_vm3, %v309_v41, %v305_v40 }
 0x777   :  { %v313_v45 = vmul.f32 %v310_v43, %v256_v21 }
 0x7d4   :  { %v316_v42 = vpop.permute.xlu0 %315 }
 0x7d5   :  { %v318_v44 = vmul.f32 %v316_v42, %v310_v43 }
 0x7d7   :  { %320 = vrot.lane.b32.xlu1 %v318_v44, %s795_s3 }
 0x849   :  { %v321_v46 = vpop.permute.xlu1 %320 }
 0x84a   :  { %v323_v47 = vadd.f32 %v321_v46, %v313_v45 }
 0x84c   :  { %707 = vtanh.f32 %v323_v47 }
 0x852   :  { %v708_v48 = vpop.eup %707 }
 0x853   :  { %326 = vrot.lane.b32.xlu2 %v708_v48, %s794_s11 }
 0x8ad   :  { %v327_v50 = vpop.permute.xlu2 %326 }
 0x8ae   :  { %v329_v51 = vmul.f32 %v327_v50, %v310_v43  ;;  %v470_v43 = vld [vmem:[#allocation2 + $0xc] sm:$0x3] }
 0x8b0   :  { %331 = vrot.lane.b32.xlu0 %v329_v51, %s795_s3 }
 0x922   :  { %v332_v54 = vpop.permute.xlu0 %331 }
 0x923   :  { %657 = vst.msk [vmem:[%s950_s4 + $0x6] sm:$0x3] %vm133_vm5, %v332_v54  ;;  %658 = vmatmul.msk.f32.vlgmr.msrb.gmra.mxu2 %vm67_vm6, %v332_v54 }
 0x9a6   :  { %v356_v56 = vpop.f32.mrf.mxu2 }
 0x9a7   :  { %v359_v57 = vadd.f32 %v356_v56, %v336_v55 }
 0x9a9   :  { %709 = vtanh.f32 %v359_v57  ;;  %v659_v59 = vmul.f32 -1.442695, %v359_v57 }
 0x9ab   :  { %711 = vpow2.f32 %v659_v59 }
 0x9af   :  { %v710_v58 = vpop.eup %709 }
 0x9b0   :  { %382 = vrot.lane.b32.xlu1 %v710_v58, %s794_s11 }
 0x9b1   :  { %v712_v60 = vpop.eup %711 }
 0x9b2   :  { %v363_v8 = vadd.f32 1.0, %v712_v60 }
 0x9b4   :  { %713 = vrcp.f32 %v363_v8  ;;  %v375_v2 = vand.u32 2147483648, %v363_v8  ;;  %vm369_vm4 = vweird.f32 %v363_v8  ;;  %v373_v3 = vand.u32 2147483647, %v363_v8 }
 0x9b6   :  { %v376_v5 = vor.u32 1.1754944e-38, %v375_v2  ;;  %vm374_vm8 = vcmp.eq.f32.partialorder %v373_v3, 8.507059e+37 }
 0x9ba   :  { %v714_v61 = vpop.eup %713 }
 0x9bb   :  { %v365_v62 = vmul.f32 %v714_v61, %v363_v8  ;;  %vm370_vm0 = vweird.f32 %v714_v61 }
 0x9bc   :  { %vm371_vm7 = vmor %vm369_vm4, %vm370_vm0 }
 0x9bd   :  { %v366_v63 = vsub.f32 1.0, %v365_v62 }
 0x9bf   :  { %v367_v0 = vmul.f32 %v714_v61, %v366_v63 }
 0x9c1   :  { %v368_v1 = vadd.f32 %v714_v61, %v367_v0 }
 0x9c3   :  { %v372_v4 = vsel %vm371_vm7, %v714_v61, %v368_v1 }
 0x9c4   :  { %v377_v7 = vsel %vm374_vm8, %v376_v5, %v372_v4  ;;  %v537_v4 = vld [vmem:[#allocation2 + $0xe] sm:$0x3] }
 0x9c5   :  { %v380_v10 = vmul.f32 %v377_v7, %v323_v47 }
 0xa22   :  { %v383_v6 = vpop.permute.xlu1 %382 }
 0xa23   :  { %v385_v9 = vmul.f32 %v383_v6, %v377_v7 }
 0xa25   :  { %387 = vrot.lane.b32.xlu2 %v385_v9, %s795_s3 }
 0xa7f   :  { %v388_v11 = vpop.permute.xlu2 %387 }
 0xa80   :  { %v390_v12 = vadd.f32 %v388_v11, %v380_v10 }
 0xa82   :  { %715 = vtanh.f32 %v390_v12 }
 0xa88   :  { %v716_v13 = vpop.eup %715 }
 0xa89   :  { %393 = vrot.lane.b32.xlu0 %v716_v13, %s794_s11 }
 0xafb   :  { %v394_v14 = vpop.permute.xlu0 %393 }
 0xafc   :  { %v396_v15 = vmul.f32 %v394_v14, %v377_v7 }
 0xafe   :  { %398 = vrot.lane.b32.xlu1 %v396_v15, %s795_s3 }
 0xb70   :  { %v399_v16 = vpop.permute.xlu1 %398 }
 0xb71   :  { %660 = vst.msk [vmem:[%s950_s4 + $0x8] sm:$0x3] %vm133_vm5, %v399_v16  ;;  %661 = vmatmul.msk.f32.vlgmr.msrb.gmra.mxu3 %vm67_vm6, %v399_v16 }
 0xbf4   :  { %v423_v18 = vpop.f32.mrf.mxu3 }
 0xbf5   :  { %v426_v19 = vadd.f32 %v423_v18, %v403_v17 }
 0xbf7   :  { %717 = vtanh.f32 %v426_v19  ;;  %v662_v21 = vmul.f32 -1.442695, %v426_v19 }
 0xbf9   :  { %719 = vpow2.f32 %v662_v21 }
 0xbfd   :  { %v718_v20 = vpop.eup %717 }
 0xbfe   :  { %449 = vrot.lane.b32.xlu2 %v718_v20, %s794_s11 }
 0xbff   :  { %v720_v22 = vpop.eup %719 }
 0xc00   :  { %v430_v23 = vadd.f32 1.0, %v720_v22 }
 0xc02   :  { %721 = vrcp.f32 %v430_v23  ;;  %v442_v29 = vand.u32 2147483648, %v430_v23  ;;  %vm436_vm10 = vweird.f32 %v430_v23  ;;  %v440_v30 = vand.u32 2147483647, %v430_v23 }
 0xc04   :  { %v443_v32 = vor.u32 1.1754944e-38, %v442_v29  ;;  %vm441_vm12 = vcmp.eq.f32.partialorder %v440_v30, 8.507059e+37 }
 0xc08   :  { %v722_v24 = vpop.eup %721 }
 0xc09   :  { %v432_v25 = vmul.f32 %v722_v24, %v430_v23  ;;  %vm437_vm9 = vweird.f32 %v722_v24 }
 0xc0a   :  { %vm438_vm11 = vmor %vm436_vm10, %vm437_vm9 }
 0xc0b   :  { %v433_v26 = vsub.f32 1.0, %v432_v25 }
 0xc0d   :  { %v434_v27 = vmul.f32 %v722_v24, %v433_v26 }
 0xc0f   :  { %v435_v28 = vadd.f32 %v722_v24, %v434_v27 }
 0xc11   :  { %v439_v31 = vsel %vm438_vm11, %v722_v24, %v435_v28 }
 0xc12   :  { %v444_v34 = vsel %vm441_vm12, %v443_v32, %v439_v31 }
 0xc13   :  { %v447_v36 = vmul.f32 %v444_v34, %v390_v12 }
 0xc58   :  { %v450_v33 = vpop.permute.xlu2 %449 }
 0xc59   :  { %v452_v35 = vmul.f32 %v450_v33, %v444_v34 }
 0xc5b   :  { %454 = vrot.lane.b32.xlu0 %v452_v35, %s795_s3 }
 0xccd   :  { %v455_v37 = vpop.permute.xlu0 %454 }
 0xcce   :  { %v457_v38 = vadd.f32 %v455_v37, %v447_v36 }
 0xcd0   :  { %723 = vtanh.f32 %v457_v38 }
 0xcd6   :  { %v724_v39 = vpop.eup %723 }
 0xcd7   :  { %460 = vrot.lane.b32.xlu1 %v724_v39, %s794_s11 }
 0xd49   :  { %v461_v40 = vpop.permute.xlu1 %460 }
 0xd4a   :  { %v463_v41 = vmul.f32 %v461_v40, %v444_v34 }
 0xd4c   :  { %465 = vrot.lane.b32.xlu2 %v463_v41, %s795_s3 }
 0xda6   :  { %v466_v42 = vpop.permute.xlu2 %465 }
 0xda7   :  { %663 = vst.msk [vmem:[%s950_s4 + $0xa] sm:$0x3] %vm133_vm5, %v466_v42  ;;  %664 = vmatmul.msk.f32.vlgmr.msrb.gmra.mxu0 %vm67_vm6, %v466_v42 }
 0xe24   :  { %v490_v44 = vpop.f32.mrf.mxu0 }
 0xe25   :  { %v493_v45 = vadd.f32 %v490_v44, %v470_v43 }
 0xe27   :  { %725 = vtanh.f32 %v493_v45  ;;  %v665_v47 = vmul.f32 -1.442695, %v493_v45 }
 0xe29   :  { %727 = vpow2.f32 %v665_v47 }
 0xe2d   :  { %v726_v46 = vpop.eup %725 }
 0xe2e   :  { %516 = vrot.lane.b32.xlu0 %v726_v46, %s794_s11 }
 0xe2f   :  { %v728_v48 = vpop.eup %727 }
 0xe30   :  { %v497_v49 = vadd.f32 1.0, %v728_v48 }
 0xe32   :  { %729 = vrcp.f32 %v497_v49  ;;  %v509_v55 = vand.u32 2147483648, %v497_v49  ;;  %vm503_vm14 = vweird.f32 %v497_v49  ;;  %v507_v56 = vand.u32 2147483647, %v497_v49 }
 0xe34   :  { %v510_v58 = vor.u32 1.1754944e-38, %v509_v55  ;;  %vm508_vm1 = vcmp.eq.f32.partialorder %v507_v56, 8.507059e+37 }
 0xe38   :  { %v730_v50 = vpop.eup %729 }
 0xe39   :  { %v499_v51 = vmul.f32 %v730_v50, %v497_v49  ;;  %vm504_vm13 = vweird.f32 %v730_v50 }
 0xe3a   :  { %vm505_vm15 = vmor %vm503_vm14, %vm504_vm13 }
 0xe3b   :  { %v500_v52 = vsub.f32 1.0, %v499_v51 }
 0xe3d   :  { %v501_v53 = vmul.f32 %v730_v50, %v500_v52 }
 0xe3f   :  { %v502_v54 = vadd.f32 %v730_v50, %v501_v53 }
 0xe41   :  { %v506_v57 = vsel %vm505_vm15, %v730_v50, %v502_v54 }
 0xe42   :  { %v511_v60 = vsel %vm508_vm1, %v510_v58, %v506_v57 }
 0xe43   :  { %v514_v61 = vmul.f32 %v511_v60, %v457_v38 }
 0xea0   :  { %v517_v59 = vpop.permute.xlu0 %516 }
 0xea1   :  { %v519_v8 = vmul.f32 %v517_v59, %v511_v60 }
 0xea3   :  { %521 = vrot.lane.b32.xlu1 %v519_v8, %s795_s3 }
 0xf15   :  { %v522_v62 = vpop.permute.xlu1 %521 }
 0xf16   :  { %v524_v63 = vadd.f32 %v522_v62, %v514_v61 }
 0xf18   :  { %731 = vtanh.f32 %v524_v63 }
 0xf1e   :  { %v732_v0 = vpop.eup %731 }
 0xf1f   :  { %527 = vrot.lane.b32.xlu2 %v732_v0, %s794_s11 }
 0xf79   :  { %v528_v1 = vpop.permute.xlu2 %527 }
 0xf7a   :  { %v530_v2 = vmul.f32 %v528_v1, %v511_v60 }
 0xf7c   :  { %532 = vrot.lane.b32.xlu0 %v530_v2, %s795_s3 }
 0xfee   :  { %v533_v3 = vpop.permute.xlu0 %532 }
 0xfef   :  { %666 = vst.msk [vmem:[%s950_s4 + $0xc] sm:$0x3] %vm133_vm5, %v533_v3  ;;  %667 = vmatmul.msk.f32.vlgmr.msra.gmra.mxu1 %vm67_vm6, %v533_v3 }
0x106c   :  { %v557_v5 = vpop.f32.mrf.mxu1 }
0x106d   :  { %v560_v6 = vadd.f32 %v557_v5, %v537_v4 }
0x106f   :  { %733 = vtanh.f32 %v560_v6  ;;  %v668_v9 = vmul.f32 -1.442695, %v560_v6 }
0x1071   :  { %735 = vpow2.f32 %v668_v9 }
0x1075   :  { %v734_v7 = vpop.eup %733 }
0x1076   :  { %583 = vrot.lane.b32.xlu1 %v734_v7, %s794_s11 }
0x1077   :  { %v736_v10 = vpop.eup %735 }
0x1078   :  { %v564_v11 = vadd.f32 1.0, %v736_v10 }
0x107a   :  { %737 = vrcp.f32 %v564_v11  ;;  %v576_v17 = vand.u32 2147483648, %v564_v11  ;;  %vm570_vm6 = vweird.f32 %v564_v11  ;;  %v574_v18 = vand.u32 2147483647, %v564_v11 }
0x107c   :  { %v577_v20 = vor.u32 1.1754944e-38, %v576_v17  ;;  %vm575_vm0 = vcmp.eq.f32.partialorder %v574_v18, 8.507059e+37 }
0x1080   :  { %v738_v12 = vpop.eup %737 }
0x1081   :  { %v566_v13 = vmul.f32 %v738_v12, %v564_v11  ;;  %vm571_vm2 = vweird.f32 %v738_v12 }
0x1082   :  { %vm572_vm3 = vmor %vm570_vm6, %vm571_vm2 }
0x1083   :  { %v567_v14 = vsub.f32 1.0, %v566_v13 }
0x1085   :  { %v568_v15 = vmul.f32 %v738_v12, %v567_v14 }
0x1087   :  { %v569_v16 = vadd.f32 %v738_v12, %v568_v15 }
0x1089   :  { %v573_v19 = vsel %vm572_vm3, %v738_v12, %v569_v16 }
0x108a   :  { %v578_v22 = vsel %vm575_vm0, %v577_v20, %v573_v19 }
0x108b   :  { %v581_v24 = vmul.f32 %v578_v22, %v524_v63 }
0x10e8   :  { %v584_v21 = vpop.permute.xlu1 %583 }
0x10e9   :  { %v586_v23 = vmul.f32 %v584_v21, %v578_v22 }
0x10eb   :  { %588 = vrot.lane.b32.xlu2 %v586_v23, %s795_s3 }
0x1145   :  { %v589_v25 = vpop.permute.xlu2 %588 }
0x1146   :  { %v591_v26 = vadd.f32 %v589_v25, %v581_v24 }
0x1148   :  { %739 = vtanh.f32 %v591_v26  ;;  %606 = vrot.lane.b32.xlu2 %v591_v26, %s796_s27 }
0x114e   :  { %v740_v27 = vpop.eup %739 }
0x114f   :  { %594 = vrot.lane.b32.xlu0 %v740_v27, %s794_s11  ;;  %s619_s11 = sshll.u32 %s951_s5, 4  ;;  %s620_s11 = int_to_ptr.hbm [resolvable:$true] %s619_s11 }
0x11a2   :  { %v607_v28 = vpop.permute.xlu2 %606 }
0x11a3   :  { %609 = vst.msk [vmem:[#allocation5] sm:$0x3] %vm133_vm5, %v607_v28 }
0x11a4   :  { %633 = dma.vmem_to_hbm [thread:$0]  %s629_s29, 32, %s631_s8, [#allocation6]  }
0x11c1   :  { %v595_v29 = vpop.permute.xlu0 %594 }
0x11c2   :  { %v597_v30 = vmul.f32 %v595_v29, %v578_v22 }
0x11c4   :  { %599 = vrot.lane.b32.xlu1 %v597_v30, %s795_s3 }
0x1236   :  { %v600_v31 = vpop.permute.xlu1 %599 }
0x1237   :  { %669 = vst.msk [vmem:[%s950_s4 + $0xe] sm:$0x3] %vm133_vm5, %v600_v31 }
0x1238   :  { %604 = vst.msk [vmem:[#allocation3] sm:$0x3] %vm133_vm5, %v600_v31 }
0x1239   :  { %622 = dma.vmem_to_hbm [thread:$0]  %s618_s9, 32, %s620_s11, [#allocation4]  }
0x123a   :  { %789 = dma.done.wait [#allocation4], 32  }
0x123b   :  { %790 = vsyncadd [#allocation4], 4294967264 }
0x123c   :  { %791 = dma.done.wait [#allocation6], 32  }
0x123d   :  { %792 = vsyncadd [#allocation6], 4294967264 }
0x123e   :  { %644 = vsyncpa [#allocation4], 1 }
0x123f   :  { %645 = vsyncpa [#allocation6], 1 }

</bundles_post_ra>
